<compile_context>
chip_gen: v6e
topology: v6e:2x2x1
jax: 0.10.0
libtpu: 0.0.40
codegen_flags: <defaults>
</compile_context>

<pallas_src>
import functools

import jax
import jax.numpy as jnp
from jax.experimental import pallas as pl
from jax.experimental.pallas import tpu as pltpu

BN_EPS = 1e-5
H1, H2 = 256, 128
OUT_TRUE = 2
OUT_PAD = 8          # padded width of final projection (block last dim == full extent)
MAX_TB = 2048        # batch-tile cap (multiple of 8); safe on v7x's 64 MiB VMEM
MIN_SPLIT = 256      # force >=2 grid steps once B >= 2*MIN_SPLIT (megacore on v7x)


def _round_up(a, m):
    return ((a + m - 1) // m) * m


def _cdiv(a, b):
    return -(-a // b)


def _vmem_limit_bytes():
    """~75% of physical VMEM (48 MiB on v7x, 96 MiB on v5e/v6e), with fallback."""
    try:
        cap = getattr(pltpu.get_tpu_info(), "vmem_capacity_bytes", None)
        if cap:
            return int(min(cap * 3 // 4, 96 << 20))
    except Exception:
        pass
    return 48 << 20


def mlp_kernel(x_ref, w1_ref, b1_ref, w2_ref, b2_ref, w3_ref, b3_ref, o_ref,
               *, compute_dtype):
    x = x_ref[...].astype(compute_dtype)                              # [TB, F]

    # Linear(F, 256) + ReLU   (Dropout == identity in eval mode)
    h1 = jnp.dot(x, w1_ref[...], preferred_element_type=jnp.float32)
    h1 = jnp.maximum(h1 + b1_ref[...], 0.0)                           # [TB, 256] f32

    # Linear(256, 128) with eval-mode BatchNorm pre-folded into w2/b2
    h2 = jnp.dot(h1.astype(compute_dtype), w2_ref[...],
                 preferred_element_type=jnp.float32)
    h2 = h2 + b2_ref[...]                                             # [TB, 128] f32

    # (Dropout == identity) Linear(128, 2) padded to OUT_PAD lanes + Sigmoid
    logits = jnp.dot(h2.astype(compute_dtype), w3_ref[...],
                     preferred_element_type=jnp.float32)
    o_ref[...] = jax.nn.sigmoid(logits + b3_ref[...])                 # [TB, OUT_PAD]


def neural_network_forward(x, params, *, compute_dtype=jnp.float32):
    """x: [B, num_features] float32 -> [B, 2] float32 (eval-mode forward)."""
    (w1, b1, w2, b2, gamma, beta, mean, var, w3, b3) = params
    x = x.astype(jnp.float32)
    B, F = x.shape

    # ---- one-time parameter preparation (outside the kernel) ----
    # Fold eval-mode BatchNorm into the second Linear:
    #   y = ((h @ w2 + b2) - mean) * gamma/sqrt(var+eps) + beta
    #     =  h @ (w2 * s)  + ((b2 - mean) * s + beta),   s = gamma*rsqrt(var+eps)
    scale = gamma * jax.lax.rsqrt(var + BN_EPS)                       # [1, 128]
    w2f = w2 * scale                                                  # [256, 128]
    b2f = (b2 - mean) * scale + beta                                  # [1, 128]

    # Pad the final projection to OUT_PAD columns (sliced back to 2 afterwards).
    w3p = jnp.zeros((H2, OUT_PAD), jnp.float32).at[:, :OUT_TRUE].set(w3)
    b3p = jnp.zeros((1, OUT_PAD), jnp.float32).at[:, :OUT_TRUE].set(b3)

    # Matmul operands in compute_dtype (bf16 optional); biases stay f32.
    weights = (w1.astype(compute_dtype), b1,
               w2f.astype(compute_dtype), b2f,
               w3p.astype(compute_dtype), b3p)

    vmem_limit = _vmem_limit_bytes()

    # ---- batch tiling ----
    # VMEM bytes/row: x dbl-buf + out dbl-buf + logits + h1/h2 temps (+ bf16 casts).
    per_row = 2 * F * 4 + 3 * OUT_PAD * 4 + (H1 + H2) * 4
    if compute_dtype != jnp.float32:
        per_row += (F + H1 + H2) * 2
    weight_bytes = 2 * sum(int(w.size) * w.dtype.itemsize for w in weights)
    tile_budget = max(vmem_limit // 2 - weight_bytes, 1 << 20)
    tb_cap = max(8, min(MAX_TB, (tile_budget // per_row) // 8 * 8))

    n_tiles = _cdiv(B, tb_cap)
    if B >= 2 * MIN_SPLIT:
        n_tiles = max(n_tiles, 2)            # keep both v7x TensorCores busy
    TB = min(tb_cap, _round_up(_cdiv(B, n_tiles), 8))
    B_pad = _round_up(B, TB)
    if B_pad != B:
        x = jnp.pad(x, ((0, B_pad - B), (0, 0)))
    grid = (B_pad // TB,)

    kernel = functools.partial(mlp_kernel, compute_dtype=compute_dtype)

    def resident_spec(arr, single_buffer):
        # Full-array block, constant index_map -> stays resident in VMEM.
        if single_buffer:
            return pl.BlockSpec(arr.shape, lambda i: (0, 0),
                                pipeline_mode=pl.Buffered(1))
        return pl.BlockSpec(arr.shape, lambda i: (0, 0))

    def build(weight_specs):
        return pl.pallas_call(
            kernel,
            out_shape=jax.ShapeDtypeStruct((B_pad, OUT_PAD), jnp.float32),
            grid=grid,
            in_specs=[pl.BlockSpec((TB, F), lambda i: (i, 0))] + weight_specs,
            out_specs=pl.BlockSpec((TB, OUT_PAD), lambda i: (i, 0)),
            compiler_params=pltpu.CompilerParams(
                dimension_semantics=("parallel",),
                vmem_limit_bytes=vmem_limit,
            ),
        )

    try:
        out = build([resident_spec(w, True) for w in weights])(x, *weights)
    except Exception:
        # pipeline_mode=pl.Buffered(1) unsupported on this JAX version ->
        # fall back to plain (double-buffered) resident weight specs.
        out = build([resident_spec(w, False) for w in weights])(x, *weights)

    return out[:B, :OUT_TRUE]


def init_params(num_features, key):
    """Deterministic parameter init mimicking PyTorch defaults
    (Linear: U(-1/sqrt(fan_in), 1/sqrt(fan_in)); BN: gamma=1, beta=0,
    running_mean=0, running_var=1)."""
    ks = jax.random.split(key, 6)

    def linear(kw, kb, fan_in, fan_out):
        bound = 1.0 / jnp.sqrt(fan_in)
        w = jax.random.uniform(kw, (fan_in, fan_out), jnp.float32, -bound, bound)
        b = jax.random.uniform(kb, (1, fan_out), jnp.float32, -bound, bound)
        return w, b

    w1, b1 = linear(ks[0], ks[1], num_features, H1)
    w2, b2 = linear(ks[2], ks[3], H1, H2)
    w3, b3 = linear(ks[4], ks[5], H2, OUT_TRUE)

    gamma = jnp.ones((1, H2), jnp.float32)
    beta = jnp.zeros((1, H2), jnp.float32)
    running_mean = jnp.zeros((1, H2), jnp.float32)
    running_var = jnp.ones((1, H2), jnp.float32)

    return (w1, b1, w2, b2, gamma, beta, running_mean, running_var, w3, b3)


def reference_forward(x, params):
    (w1, b1, w2, b2, gamma, beta, mean, var, w3, b3) = params
    h1 = jnp.maximum(x @ w1 + b1, 0.0)
    h2 = h1 @ w2 + b2
    h2 = (h2 - mean) * jax.lax.rsqrt(var + BN_EPS) * gamma + beta
    return jax.nn.sigmoid(h2 @ w3 + b3)


if __name__ == "__main__":
    num_features = 32
    batch = 8

    key = jax.random.PRNGKey(0)
    k_x, k_p = jax.random.split(key)
    x = jax.random.normal(k_x, (batch, num_features), jnp.float32)
    params = init_params(num_features, k_p)
    ref = reference_forward(x, params)

    # Default f32 compute: must match the f32 reference to 1e-5.
    out = jax.block_until_ready(neural_network_forward(x, params))
    assert out.shape == (batch, OUT_TRUE), out.shape
    assert jnp.allclose(out, ref, atol=1e-5, rtol=1e-5), (out, ref)

    # Optional bf16-operand path (v6e/v7x MXU-native); looser tolerance expected.
    out_bf16 = jax.block_until_ready(
        neural_network_forward(x, params, compute_dtype=jnp.bfloat16))
    assert out_bf16.shape == (batch, OUT_TRUE), out_bf16.shape
    assert jnp.allclose(out_bf16, ref, atol=5e-2, rtol=5e-2), (out_bf16, ref)

    print("KERNEL_OK")
</pallas_src>

<mosaic_0001>
module attributes {stable_mosaic.version = 11 : i64} {
  func.func @mlp_kernel(%arg0: i32, %arg1: memref<8x32xf32, #tpu.memory_space<vmem>>, %arg2: memref<32x256xf32, #tpu.memory_space<vmem>>, %arg3: memref<1x256xf32, #tpu.memory_space<vmem>>, %arg4: memref<256x128xf32, #tpu.memory_space<vmem>>, %arg5: memref<1x128xf32, #tpu.memory_space<vmem>>, %arg6: memref<128x8xf32, #tpu.memory_space<vmem>>, %arg7: memref<1x8xf32, #tpu.memory_space<vmem>>, %arg8: memref<8x8xf32, #tpu.memory_space<vmem>>) attributes {dimension_semantics = [#tpu.dimension_semantics<parallel>], iteration_bounds = array<i64: 1>, scalar_prefetch = 0 : i64, scratch_operands = 0 : i64, tpu.core_type = #tpu.core_type<tc>, window_params = [{transform_indices = @transform_0, window_bounds = array<i64: 8, 32>}, {pipeline_mode = #tpu.pipeline_mode<synchronous>, transform_indices = @transform_1, window_bounds = array<i64: 32, 256>}, {pipeline_mode = #tpu.pipeline_mode<synchronous>, transform_indices = @transform_2, window_bounds = array<i64: 1, 256>}, {pipeline_mode = #tpu.pipeline_mode<synchronous>, transform_indices = @transform_3, window_bounds = array<i64: 256, 128>}, {pipeline_mode = #tpu.pipeline_mode<synchronous>, transform_indices = @transform_4, window_bounds = array<i64: 1, 128>}, {pipeline_mode = #tpu.pipeline_mode<synchronous>, transform_indices = @transform_5, window_bounds = array<i64: 128, 8>}, {pipeline_mode = #tpu.pipeline_mode<synchronous>, transform_indices = @transform_6, window_bounds = array<i64: 1, 8>}, {transform_indices = @transform_7, window_bounds = array<i64: 8, 8>}]} {
    %c0 = arith.constant 0 : index
    %c0_0 = arith.constant 0 : index
    %0 = vector.load %arg1[%c0, %c0_0] : memref<8x32xf32, #tpu.memory_space<vmem>>, vector<8x32xf32>
    %c0_1 = arith.constant 0 : index
    %c0_2 = arith.constant 0 : index
    %1 = vector.load %arg2[%c0_1, %c0_2] : memref<32x256xf32, #tpu.memory_space<vmem>>, vector<32x256xf32>
    %cst = arith.constant dense<0.000000e+00> : vector<8x256xf32>
    %2 = tpu.matmul %0, %1, %cst {dimension_numbers = #tpu.dot_dimension_numbers<[1], [0], [0], [1], [0, 0, 1, 1], [], []>} : vector<8x32xf32>, vector<32x256xf32>, vector<8x256xf32> -> vector<8x256xf32>
    %c0_3 = arith.constant 0 : index
    %c0_4 = arith.constant 0 : index
    %3 = vector.load %arg3[%c0_3, %c0_4] : memref<1x256xf32, #tpu.memory_space<vmem>>, vector<1x256xf32>
    %4 = vector.broadcast %3 : vector<1x256xf32> to vector<8x256xf32>
    %5 = arith.addf %2, %4 : vector<8x256xf32>
    %cst_5 = arith.constant 0.000000e+00 : f32
    %6 = vector.broadcast %cst_5 : f32 to vector<8x256xf32>
    %7 = arith.maximumf %5, %6 : vector<8x256xf32>
    %c0_6 = arith.constant 0 : index
    %c0_7 = arith.constant 0 : index
    %8 = vector.load %arg4[%c0_6, %c0_7] : memref<256x128xf32, #tpu.memory_space<vmem>>, vector<256x128xf32>
    %cst_8 = arith.constant dense<0.000000e+00> : vector<8x128xf32>
    %9 = tpu.matmul %7, %8, %cst_8 {dimension_numbers = #tpu.dot_dimension_numbers<[1], [0], [0], [1], [0, 0, 1, 1], [], []>} : vector<8x256xf32>, vector<256x128xf32>, vector<8x128xf32> -> vector<8x128xf32>
    %c0_9 = arith.constant 0 : index
    %c0_10 = arith.constant 0 : index
    %10 = vector.load %arg5[%c0_9, %c0_10] : memref<1x128xf32, #tpu.memory_space<vmem>>, vector<1x128xf32>
    %11 = vector.broadcast %10 : vector<1x128xf32> to vector<8x128xf32>
    %12 = arith.addf %9, %11 : vector<8x128xf32>
    %c0_11 = arith.constant 0 : index
    %c0_12 = arith.constant 0 : index
    %13 = vector.load %arg6[%c0_11, %c0_12] : memref<128x8xf32, #tpu.memory_space<vmem>>, vector<128x8xf32>
    %cst_13 = arith.constant dense<0.000000e+00> : vector<8x8xf32>
    %14 = tpu.matmul %12, %13, %cst_13 {dimension_numbers = #tpu.dot_dimension_numbers<[1], [0], [0], [1], [0, 0, 1, 1], [], []>} : vector<8x128xf32>, vector<128x8xf32>, vector<8x8xf32> -> vector<8x8xf32>
    %c0_14 = arith.constant 0 : index
    %c0_15 = arith.constant 0 : index
    %15 = vector.load %arg7[%c0_14, %c0_15] : memref<1x8xf32, #tpu.memory_space<vmem>>, vector<1x8xf32>
    %16 = vector.broadcast %15 : vector<1x8xf32> to vector<8x8xf32>
    %17 = arith.addf %14, %16 : vector<8x8xf32>
    %18 = arith.negf %17 : vector<8x8xf32>
    %19 = math.exp %18 : vector<8x8xf32>
    %cst_16 = arith.constant 1.000000e+00 : f32
    %20 = vector.broadcast %cst_16 : f32 to vector<8x8xf32>
    %21 = arith.addf %20, %19 : vector<8x8xf32>
    %22 = arith.divf %20, %21 : vector<8x8xf32>
    %c0_17 = arith.constant 0 : index
    %c0_18 = arith.constant 0 : index
    %23 = vector.load %arg8[%c0_17, %c0_18] : memref<8x8xf32, #tpu.memory_space<vmem>>, vector<8x8xf32>
    tpu.vector_store %arg8[%c0_17, %c0_18], %22 {strides = array<i32>} : memref<8x8xf32, #tpu.memory_space<vmem>>, vector<8x8xf32>,
    return
  }
  func.func @transform_0(%arg0: i32) -> (i32, i32) {
    %c0_i32 = arith.constant 0 : i32
    %c0_i32_0 = arith.constant 0 : i32
    return %arg0, %c0_i32 : i32, i32
  }
  func.func @transform_1(%arg0: i32) -> (i32, i32) {
    %c0_i32 = arith.constant 0 : i32
    %c0_i32_0 = arith.constant 0 : i32
    %c0_i32_1 = arith.constant 0 : i32
    return %c0_i32, %c0_i32_0 : i32, i32
  }
  func.func @transform_2(%arg0: i32) -> (i32, i32) {
    %c0_i32 = arith.constant 0 : i32
    %c0_i32_0 = arith.constant 0 : i32
    %c0_i32_1 = arith.constant 0 : i32
    return %c0_i32, %c0_i32_0 : i32, i32
  }
  func.func @transform_3(%arg0: i32) -> (i32, i32) {
    %c0_i32 = arith.constant 0 : i32
    %c0_i32_0 = arith.constant 0 : i32
    %c0_i32_1 = arith.constant 0 : i32
    return %c0_i32, %c0_i32_0 : i32, i32
  }
  func.func @transform_4(%arg0: i32) -> (i32, i32) {
    %c0_i32 = arith.constant 0 : i32
    %c0_i32_0 = arith.constant 0 : i32
    %c0_i32_1 = arith.constant 0 : i32
    return %c0_i32, %c0_i32_0 : i32, i32
  }
  func.func @transform_5(%arg0: i32) -> (i32, i32) {
    %c0_i32 = arith.constant 0 : i32
    %c0_i32_0 = arith.constant 0 : i32
    %c0_i32_1 = arith.constant 0 : i32
    return %c0_i32, %c0_i32_0 : i32, i32
  }
  func.func @transform_6(%arg0: i32) -> (i32, i32) {
    %c0_i32 = arith.constant 0 : i32
    %c0_i32_0 = arith.constant 0 : i32
    %c0_i32_1 = arith.constant 0 : i32
    return %c0_i32, %c0_i32_0 : i32, i32
  }
  func.func @transform_7(%arg0: i32) -> (i32, i32) {
    %c0_i32 = arith.constant 0 : i32
    %c0_i32_0 = arith.constant 0 : i32
    return %arg0, %c0_i32 : i32, i32
  }
}

module attributes {stable_mosaic.version = 11 : i64} {
  func.func @mlp_kernel(%arg0: i32, %arg1: memref<8x32xf32, #tpu.memory_space<vmem>>, %arg2: memref<32x256xf32, #tpu.memory_space<vmem>>, %arg3: memref<1x256xf32, #tpu.memory_space<vmem>>, %arg4: memref<256x128xf32, #tpu.memory_space<vmem>>, %arg5: memref<1x128xf32, #tpu.memory_space<vmem>>, %arg6: memref<128x8xf32, #tpu.memory_space<vmem>>, %arg7: memref<1x8xf32, #tpu.memory_space<vmem>>, %arg8: memref<8x8xf32, #tpu.memory_space<vmem>>) attributes {dimension_semantics = [#tpu.dimension_semantics<parallel>], iteration_bounds = array<i64: 1>, scalar_prefetch = 0 : i64, scratch_operands = 0 : i64, tpu.core_type = #tpu.core_type<tc>, window_params = [{transform_indices = @transform_0, window_bounds = array<i64: 8, 32>}, {pipeline_mode = #tpu.pipeline_mode<synchronous>, transform_indices = @transform_1, window_bounds = array<i64: 32, 256>}, {pipeline_mode = #tpu.pipeline_mode<synchronous>, transform_indices = @transform_2, window_bounds = array<i64: 1, 256>}, {pipeline_mode = #tpu.pipeline_mode<synchronous>, transform_indices = @transform_3, window_bounds = array<i64: 256, 128>}, {pipeline_mode = #tpu.pipeline_mode<synchronous>, transform_indices = @transform_4, window_bounds = array<i64: 1, 128>}, {pipeline_mode = #tpu.pipeline_mode<synchronous>, transform_indices = @transform_5, window_bounds = array<i64: 128, 8>}, {pipeline_mode = #tpu.pipeline_mode<synchronous>, transform_indices = @transform_6, window_bounds = array<i64: 1, 8>}, {transform_indices = @transform_7, window_bounds = array<i64: 8, 8>}]} {
    %c0 = arith.constant 0 : index
    %c0_0 = arith.constant 0 : index
    %0 = vector.load %arg1[%c0, %c0_0] : memref<8x32xf32, #tpu.memory_space<vmem>>, vector<8x32xf32>
    %c0_1 = arith.constant 0 : index
    %c0_2 = arith.constant 0 : index
    %1 = vector.load %arg2[%c0_1, %c0_2] : memref<32x256xf32, #tpu.memory_space<vmem>>, vector<32x256xf32>
    %cst = arith.constant dense<0.000000e+00> : vector<8x256xf32>
    %2 = tpu.matmul %0, %1, %cst {dimension_numbers = #tpu.dot_dimension_numbers<[1], [0], [0], [1], [0, 0, 1, 1], [], []>} : vector<8x32xf32>, vector<32x256xf32>, vector<8x256xf32> -> vector<8x256xf32>
    %c0_3 = arith.constant 0 : index
    %c0_4 = arith.constant 0 : index
    %3 = vector.load %arg3[%c0_3, %c0_4] : memref<1x256xf32, #tpu.memory_space<vmem>>, vector<1x256xf32>
    %4 = vector.broadcast %3 : vector<1x256xf32> to vector<8x256xf32>
    %5 = arith.addf %2, %4 : vector<8x256xf32>
    %cst_5 = arith.constant 0.000000e+00 : f32
    %6 = vector.broadcast %cst_5 : f32 to vector<8x256xf32>
    %7 = arith.maximumf %5, %6 : vector<8x256xf32>
    %c0_6 = arith.constant 0 : index
    %c0_7 = arith.constant 0 : index
    %8 = vector.load %arg4[%c0_6, %c0_7] : memref<256x128xf32, #tpu.memory_space<vmem>>, vector<256x128xf32>
    %cst_8 = arith.constant dense<0.000000e+00> : vector<8x128xf32>
    %9 = tpu.matmul %7, %8, %cst_8 {dimension_numbers = #tpu.dot_dimension_numbers<[1], [0], [0], [1], [0, 0, 1, 1], [], []>} : vector<8x256xf32>, vector<256x128xf32>, vector<8x128xf32> -> vector<8x128xf32>
    %c0_9 = arith.constant 0 : index
    %c0_10 = arith.constant 0 : index
    %10 = vector.load %arg5[%c0_9, %c0_10] : memref<1x128xf32, #tpu.memory_space<vmem>>, vector<1x128xf32>
    %11 = vector.broadcast %10 : vector<1x128xf32> to vector<8x128xf32>
    %12 = arith.addf %9, %11 : vector<8x128xf32>
    %c0_11 = arith.constant 0 : index
    %c0_12 = arith.constant 0 : index
    %13 = vector.load %arg6[%c0_11, %c0_12] : memref<128x8xf32, #tpu.memory_space<vmem>>, vector<128x8xf32>
    %cst_13 = arith.constant dense<0.000000e+00> : vector<8x8xf32>
    %14 = tpu.matmul %12, %13, %cst_13 {dimension_numbers = #tpu.dot_dimension_numbers<[1], [0], [0], [1], [0, 0, 1, 1], [], []>} : vector<8x128xf32>, vector<128x8xf32>, vector<8x8xf32> -> vector<8x8xf32>
    %c0_14 = arith.constant 0 : index
    %c0_15 = arith.constant 0 : index
    %15 = vector.load %arg7[%c0_14, %c0_15] : memref<1x8xf32, #tpu.memory_space<vmem>>, vector<1x8xf32>
    %16 = vector.broadcast %15 : vector<1x8xf32> to vector<8x8xf32>
    %17 = arith.addf %14, %16 : vector<8x8xf32>
    %18 = arith.negf %17 : vector<8x8xf32>
    %19 = math.exp %18 : vector<8x8xf32>
    %cst_16 = arith.constant 1.000000e+00 : f32
    %20 = vector.broadcast %cst_16 : f32 to vector<8x8xf32>
    %21 = arith.addf %20, %19 : vector<8x8xf32>
    %22 = arith.divf %20, %21 : vector<8x8xf32>
    %c0_17 = arith.constant 0 : index
    %c0_18 = arith.constant 0 : index
    %23 = vector.load %arg8[%c0_17, %c0_18] : memref<8x8xf32, #tpu.memory_space<vmem>>, vector<8x8xf32>
    tpu.vector_store %arg8[%c0_17, %c0_18], %22 {strides = array<i32>} : memref<8x8xf32, #tpu.memory_space<vmem>>, vector<8x8xf32>,
    return
  }
  func.func @transform_0(%arg0: i32) -> (i32, i32) {
    %c0_i32 = arith.constant 0 : i32
    %c0_i32_0 = arith.constant 0 : i32
    return %arg0, %c0_i32 : i32, i32
  }
  func.func @transform_1(%arg0: i32) -> (i32, i32) {
    %c0_i32 = arith.constant 0 : i32
    %c0_i32_0 = arith.constant 0 : i32
    %c0_i32_1 = arith.constant 0 : i32
    return %c0_i32, %c0_i32_0 : i32, i32
  }
  func.func @transform_2(%arg0: i32) -> (i32, i32) {
    %c0_i32 = arith.constant 0 : i32
    %c0_i32_0 = arith.constant 0 : i32
    %c0_i32_1 = arith.constant 0 : i32
    return %c0_i32, %c0_i32_0 : i32, i32
  }
  func.func @transform_3(%arg0: i32) -> (i32, i32) {
    %c0_i32 = arith.constant 0 : i32
    %c0_i32_0 = arith.constant 0 : i32
    %c0_i32_1 = arith.constant 0 : i32
    return %c0_i32, %c0_i32_0 : i32, i32
  }
  func.func @transform_4(%arg0: i32) -> (i32, i32) {
    %c0_i32 = arith.constant 0 : i32
    %c0_i32_0 = arith.constant 0 : i32
    %c0_i32_1 = arith.constant 0 : i32
    return %c0_i32, %c0_i32_0 : i32, i32
  }
  func.func @transform_5(%arg0: i32) -> (i32, i32) {
    %c0_i32 = arith.constant 0 : i32
    %c0_i32_0 = arith.constant 0 : i32
    %c0_i32_1 = arith.constant 0 : i32
    return %c0_i32, %c0_i32_0 : i32, i32
  }
  func.func @transform_6(%arg0: i32) -> (i32, i32) {
    %c0_i32 = arith.constant 0 : i32
    %c0_i32_0 = arith.constant 0 : i32
    %c0_i32_1 = arith.constant 0 : i32
    return %c0_i32, %c0_i32_0 : i32, i32
  }
  func.func @transform_7(%arg0: i32) -> (i32, i32) {
    %c0_i32 = arith.constant 0 : i32
    %c0_i32_0 = arith.constant 0 : i32
    return %arg0, %c0_i32 : i32, i32
  }
}

</mosaic_0001>

<bundles_post_ra>
// kernel: tpu_custom_call.1
= control target key start
LH: loop header
LB: loop body
LE: loop exit
PB: predicated region body
PF: predicated region fallthrough
CT: control target
= control target key end

     0   :  { %12 = vsyncpa [#allocation3], 0  ;;  %s663_s0 = inlined_call_operand.vmem [shape: f32[8,32], index: 0, kind: input, shape index: {}]   ;;  %s664_s1 = inlined_call_operand.vmem [shape: f32[32,256], index: 1, kind: input, shape index: {}]   ;;  %s665_s2 = inlined_call_operand.vmem [shape: f32[1,256], index: 2, kind: input, shape index: {}]   ;;  %s666_s3 = inlined_call_operand.hbm [shape: f32[256,128], index: 3, kind: input, shape index: {}]   ;;  %s667_s4 = inlined_call_operand.vmem [shape: f32[1,128], index: 4, kind: input, shape index: {}]   ;;  %s668_s5 = inlined_call_operand.vmem [shape: f32[128,8], index: 5, kind: input, shape index: {}]   ;;  %s669_s6 = inlined_call_operand.vmem [shape: f32[1,8], index: 6, kind: input, shape index: {}]   ;;  %s670_s7 = inlined_call_operand.hbm [shape: f32[8,8], index: 7, kind: output, shape index: {}]  }
   0x1   :  { %13 = vsyncpa [#allocation4], 0  ;;  %s509_s24 = smov [#allocation2]  }
   0x2   :  { %s25_s25 = sshll.u32 %s509_s24, 4  ;;  %s26_s25 = int_to_ptr.vmem [resolvable:$true] %s25_s25 }
   0x3   :  { %s473_s26 = scalar_lea.vmem %s26_s25, 4096  ;;  %p478_p1 = scmp.lt.s32.totalorder %s26_s25, %s26_s25 }
   0x4   :  { %p474_p0 = scmp.ne.s32.totalorder %s26_s25, %s473_s26  ;;  %p479_p2 = scmp.lt.s32.totalorder %s473_s26, %s473_s26 }
   0x6   :  { %p480_p3 = por %p479_p2, %p478_p1 }
   0x8   :  { %p481_p4 = pnand %p480_p3, %p474_p0 }
   0xa   :  { %484 = shalt.err (!%p481_p4)
}
   0xb   :  { %s510_s27 = smov 128   ;;  %s511_s28 = smov 8  }
   0xc   :  { %31 = dma.hbm_to_vmem [thread:$0]  %s666_s3, 4096, %s26_s25, [#allocation3], %s510_s27, %s510_s27, %s511_s28  }
   0xd   :  { %505 = dma.done.wait [#allocation3], 4096  }
   0xe   :  { %506 = vsyncadd [#allocation3], 4294963200  ;;  %v512_v0 = vmov 0.0   ;;  %v49_v1 = vld [vmem:[%s664_s1 + $0x38] sm:$0xff]  ;;  %v48_v2 = vld [vmem:[%s664_s1 + $0x30] sm:$0xff]  ;;  %vm62_vm0 = vcmask 261120   ;;  %v52_v54 = vlaneseq }
   0xf   :  { %130 = vmatprep.mubr.f32.mxu0 %v512_v0  ;;  %v47_v3 = vld [vmem:[%s664_s1 + $0x28] sm:$0xff]  ;;  %90 = vmatprep.subr.mxu0 %v49_v1  ;;  %v46_v4 = vld [vmem:[%s664_s1 + $0x20] sm:$0xff]  ;;  %v45_v5 = vld [vmem:[%s664_s1 + $0x18] sm:$0xff]  ;;  %vm513_vm1 = vmmov 0   ;;  %vm347_vm2 = vcmask 64512  }
  0x10   :  { %91 = vmatpush1.msra.mxu0 %v48_v2  ;;  %v44_v6 = vld [vmem:[%s664_s1 + $0x10] sm:$0xff]  ;;  %v170_v7 = vld [vmem:[#allocation2 + $0xf8] sm:$0xff]  ;;  %v43_v10 = vld [vmem:[%s664_s1 + $0x8] sm:$0xff]  ;;  %v53_v55 = vshrl.u32 %v52_v54, 7 }
  0x11   :  { %92 = vmatprep.subr.mxu0 %v47_v3  ;;  %v154_v8 = vld [vmem:[#allocation2 + $0x78] sm:$0xff]  ;;  %v169_v9 = vld [vmem:[#allocation2 + $0xf0] sm:$0xff]  ;;  %368 = vmatprep.subr.mxu1 %v170_v7  ;;  %v42_v12 = vld [vmem:[%s664_s1] sm:$0xff] }
  0x12   :  { %93 = vmatpush1.msra.mxu0 %v46_v4  ;;  %v153_v11 = vld [vmem:[#allocation2 + $0x70] sm:$0xff]  ;;  %369 = vmatpush3.msra.mxu1 %v154_v8  ;;  %v168_v13 = vld [vmem:[#allocation2 + $0xe8] sm:$0xff]  ;;  %v41_v14 = vld [vmem:[%s663_s0] sm:$0xff]  ;;  %v54_v56 = vsub.s32 0, %v53_v55  ;;  %v58_v58 = vsub.s32 1, %v53_v55 }
  0x13   :  { %94 = vmatprep.subr.mxu0 %v45_v5  ;;  %370 = vmatprep.subr.mxu1 %v169_v9  ;;  %v152_v15 = vld [vmem:[#allocation2 + $0x68] sm:$0xff]  ;;  %v167_v16 = vld [vmem:[#allocation2 + $0xe0] sm:$0xff]  ;;  %v166_v18 = vld [vmem:[#allocation2 + $0xd8] sm:$0xff] }
  0x14   :  { %95 = vmatpush1.msra.mxu0 %v44_v6  ;;  %371 = vmatpush3.msra.mxu1 %v153_v11  ;;  %v151_v17 = vld [vmem:[#allocation2 + $0x60] sm:$0xff]  ;;  %v150_v19 = vld [vmem:[#allocation2 + $0x58] sm:$0xff]  ;;  %v165_v20 = vld [vmem:[#allocation2 + $0xd0] sm:$0xff] }
  0x15   :  { %96 = vmatprep.subr.mxu0 %v43_v10  ;;  %372 = vmatprep.subr.mxu1 %v168_v13  ;;  %v149_v21 = vld [vmem:[#allocation2 + $0x50] sm:$0xff]  ;;  %v164_v22 = vld [vmem:[#allocation2 + $0xc8] sm:$0xff]  ;;  %v163_v24 = vld [vmem:[#allocation2 + $0xc0] sm:$0xff] }
  0x16   :  { %97 = vmatpush1.msra.mxu0 %v42_v12  ;;  %373 = vmatpush3.msra.mxu1 %v152_v15  ;;  %v148_v23 = vld [vmem:[#allocation2 + $0x48] sm:$0xff]  ;;  %v147_v25 = vld [vmem:[#allocation2 + $0x40] sm:$0xff]  ;;  %v162_v26 = vld [vmem:[#allocation2 + $0xb8] sm:$0xff] }
  0x17   :  { %364 = vmatmul.mubr.msk.f32.vlgmr.msra.gmra.mxu0 %vm62_vm0, %v41_v14  ;;  %374 = vmatprep.subr.mxu1 %v167_v16  ;;  %v146_v27 = vld [vmem:[#allocation2 + $0x38] sm:$0xff]  ;;  %v161_v28 = vld [vmem:[#allocation2 + $0xb0] sm:$0xff]  ;;  %v160_v30 = vld [vmem:[#allocation2 + $0xa8] sm:$0xff] }
  0x18   :  { %420 = vmatprep.subr.mxu0 %v512_v0  ;;  %375 = vmatpush3.msra.mxu1 %v151_v17  ;;  %v145_v29 = vld [vmem:[#allocation2 + $0x30] sm:$0xff]  ;;  %v144_v31 = vld [vmem:[#allocation2 + $0x28] sm:$0xff]  ;;  %v159_v32 = vld [vmem:[#allocation2 + $0xa0] sm:$0xff] }
  0x19   :  { %376 = vmatprep.subr.mxu1 %v166_v18  ;;  %v143_v33 = vld [vmem:[#allocation2 + $0x20] sm:$0xff]  ;;  %v158_v34 = vld [vmem:[#allocation2 + $0x98] sm:$0xff]  ;;  %v157_v36 = vld [vmem:[#allocation2 + $0x90] sm:$0xff]  ;;  %452 = vmatprep.mubr.msk.f32.mxu0 %vm513_vm1, %v512_v0 }
  0x1a   :  { %377 = vmatpush3.msra.mxu1 %v150_v19  ;;  %v142_v35 = vld [vmem:[#allocation2 + $0x18] sm:$0xff]  ;;  %v141_v37 = vld [vmem:[#allocation2 + $0x10] sm:$0xff]  ;;  %v156_v38 = vld [vmem:[#allocation2 + $0x88] sm:$0xff] }
  0x1b   :  { %378 = vmatprep.subr.mxu1 %v165_v20  ;;  %v140_v39 = vld [vmem:[#allocation2 + $0x8] sm:$0xff]  ;;  %v155_v40 = vld [vmem:[#allocation2 + $0x80] sm:$0xff]  ;;  %v263_v42 = vld [vmem:[%s668_s5 + $0x78] sm:$0xff] }
  0x1c   :  { %379 = vmatpush3.msra.mxu1 %v149_v21  ;;  %v139_v41 = vld [vmem:[#allocation2] sm:$0xff]  ;;  %v262_v43 = vld [vmem:[%s668_s5 + $0x70] sm:$0xff]  ;;  %421 = vmatpush3.msra.mxu0 %v263_v42  ;;  %v261_v44 = vld [vmem:[%s668_s5 + $0x68] sm:$0xff] }
  0x1d   :  { %380 = vmatprep.subr.mxu1 %v164_v22  ;;  %422 = vmatprep.subr.mxu0 %v512_v0  ;;  %v260_v45 = vld [vmem:[%s668_s5 + $0x60] sm:$0xff]  ;;  %v259_v46 = vld [vmem:[%s668_s5 + $0x58] sm:$0xff]  ;;  %v258_v47 = vld [vmem:[%s668_s5 + $0x50] sm:$0xff] }
  0x1e   :  { %381 = vmatpush3.msra.mxu1 %v148_v23  ;;  %423 = vmatpush3.msra.mxu0 %v262_v43  ;;  %v257_v48 = vld [vmem:[%s668_s5 + $0x48] sm:$0xff]  ;;  %v256_v49 = vld [vmem:[%s668_s5 + $0x40] sm:$0xff]  ;;  %v255_v50 = vld [vmem:[%s668_s5 + $0x38] sm:$0xff] }
  0x1f   :  { %382 = vmatprep.subr.mxu1 %v163_v24  ;;  %424 = vmatprep.subr.mxu0 %v512_v0  ;;  %v254_v51 = vld [vmem:[%s668_s5 + $0x30] sm:$0xff]  ;;  %v253_v52 = vld [vmem:[%s668_s5 + $0x28] sm:$0xff]  ;;  %v252_v53 = vld [vmem:[%s668_s5 + $0x20] sm:$0xff] }
  0x20   :  { %383 = vmatpush3.msra.mxu1 %v147_v25  ;;  %425 = vmatpush3.msra.mxu0 %v261_v44  ;;  %v50_v57 = vld [vmem:[%s665_s2] sm:$0x3]  ;;  %v251_v4 = vld [vmem:[%s668_s5 + $0x18] sm:$0xff]  ;;  %v250_v5 = vld [vmem:[%s668_s5 + $0x10] sm:$0xff] }
  0x21   :  { %384 = vmatprep.subr.mxu1 %v162_v26  ;;  %426 = vmatprep.subr.mxu0 %v512_v0  ;;  %v55_v59 = vrot.slane %v50_v57, %v54_v56  ;;  %v59_v60 = vrot.slane %v50_v57, %v58_v58  ;;  %v249_v6 = vld [vmem:[%s668_s5 + $0x8] sm:$0xff]  ;;  %v248_v7 = vld [vmem:[%s668_s5] sm:$0xff]  ;;  %s514_s5 = smov [#allocation5]  }
  0x22   :  { %385 = vmatpush3.msra.mxu1 %v146_v27  ;;  %427 = vmatpush3.msra.mxu0 %v260_v45  ;;  %v365_v9 = vld [vmem:[%s667_s4] ss:$0 sm:$0xff]  ;;  %s355_s11 = sshll.u32 %s514_s5, 4  ;;  %s356_s11 = int_to_ptr.vmem [resolvable:$true] %s355_s11 }
  0x23   :  { %386 = vmatprep.subr.mxu1 %v161_v28  ;;  %428 = vmatprep.subr.mxu0 %v512_v0  ;;  %v366_v13 = vld [vmem:[%s669_s6] ss:$0 sm:$0xff]  ;;  %s485_s4 = scalar_lea.vmem %s356_s11, 128  ;;  %p490_p6 = scmp.lt.s32.totalorder %s356_s11, %s356_s11 }
  0x24   :  { %387 = vmatpush3.msra.mxu1 %v145_v29  ;;  %429 = vmatpush3.msra.mxu0 %v259_v46  ;;  %p486_p5 = scmp.ne.s32.totalorder %s356_s11, %s485_s4  ;;  %p491_p7 = scmp.lt.s32.totalorder %s485_s4, %s485_s4 }
  0x25   :  { %388 = vmatprep.subr.mxu1 %v160_v30  ;;  %430 = vmatprep.subr.mxu0 %v512_v0 }
  0x26   :  { %389 = vmatpush3.msra.mxu1 %v144_v31  ;;  %431 = vmatpush3.msra.mxu0 %v258_v47  ;;  %p492_p8 = por %p491_p7, %p490_p6 }
  0x27   :  { %390 = vmatprep.subr.mxu1 %v159_v32  ;;  %432 = vmatprep.subr.mxu0 %v512_v0 }
  0x28   :  { %391 = vmatpush3.msra.mxu1 %v143_v33  ;;  %433 = vmatpush3.msra.mxu0 %v257_v48  ;;  %p493_p9 = pnand %p492_p8, %p486_p5 }
  0x29   :  { %392 = vmatprep.subr.mxu1 %v158_v34  ;;  %434 = vmatprep.subr.mxu0 %v512_v0 }
  0x2a   :  { %393 = vmatpush3.msra.mxu1 %v142_v35  ;;  %435 = vmatpush3.msra.mxu0 %v256_v49 }
  0x2b   :  { %394 = vmatprep.subr.mxu1 %v157_v36  ;;  %436 = vmatprep.subr.mxu0 %v512_v0 }
  0x2c   :  { %395 = vmatpush3.msra.mxu1 %v141_v37  ;;  %437 = vmatpush3.msra.mxu0 %v255_v50 }
  0x2d   :  { %396 = vmatprep.subr.mxu1 %v156_v38  ;;  %438 = vmatprep.subr.mxu0 %v512_v0 }
  0x2e   :  { %397 = vmatpush3.msra.mxu1 %v140_v39  ;;  %439 = vmatpush3.msra.mxu0 %v254_v51 }
  0x2f   :  { %398 = vmatprep.subr.mxu1 %v155_v40  ;;  %440 = vmatprep.subr.mxu0 %v512_v0 }
  0x30   :  { %399 = vmatpush3.msra.mxu1 %v139_v41  ;;  %441 = vmatpush3.msra.mxu0 %v253_v52 }
  0x31   :  { %442 = vmatprep.subr.mxu0 %v512_v0 }
  0x32   :  { %443 = vmatpush3.msra.mxu0 %v252_v53 }
  0x33   :  { %444 = vmatprep.subr.mxu0 %v512_v0 }
  0x34   :  { %445 = vmatpush3.msra.mxu0 %v251_v4 }
  0x35   :  { %446 = vmatprep.subr.mxu0 %v512_v0 }
  0x36   :  { %447 = vmatpush3.msra.mxu0 %v250_v5 }
  0x37   :  { %448 = vmatprep.subr.mxu0 %v512_v0 }
  0x38   :  { %449 = vmatpush3.msra.mxu0 %v249_v6 }
  0x39   :  { %450 = vmatprep.subr.mxu0 %v512_v0 }
  0x3a   :  { %451 = vmatpush3.msra.mxu0 %v248_v7 }
  0xd7   :  { %v132_v61 = vpop.f32.mrf.mxu0 }
  0xd8   :  { %v133_v62 = vadd.f32 %v132_v61, %v55_v59 }
  0xd9   :  { %v134_v63 = vpop.f32.mrf.mxu0 }
  0xda   :  { %v135_v1 = vadd.f32 %v134_v63, %v59_v60  ;;  %v137_v3 = vmax.f32 %v133_v62, 0.0 }
  0xdc   :  { %v138_v2 = vmax.f32 %v135_v1, 0.0 }
  0xde   :  { %242 = vmatprep.mubr.f32.mxu1 %v138_v2 }
  0xdf   :  { %243 = vmatmul.mubr.f32.vlgmr.msra.gmra.mxu1 %v137_v3 }
 0x19f   :  { %v400_v8 = vpop.f32.mrf.mxu1 }
 0x1a1   :  { %v401_v10 = vpop.f32.mrf.mxu1 }
 0x1a2   :  { %v402_v11 = vadd.f32 %v401_v10, %v400_v8 }
 0x1a4   :  { %v245_v12 = vadd.f32 %v402_v11, %v365_v9 }
 0x1a6   :  { %453 = vmatmul.mubr.f32.vlgmr.msra.gmra.mxu0 %v245_v12 }
 0x266   :  { %v337_v14 = vpop.f32.mrf.mxu0 }
 0x267   :  { %v338_v15 = vadd.f32 %v366_v13, %v337_v14 }
 0x268   :  { %v454_v16 = vpop.f32.mrf.mxu0 }
 0x269   :  { %v367_v17 = vmul.f32 -1.442695, %v338_v15 }
 0x26b   :  { %461 = vpow2.f32 %v367_v17 }
 0x278   :  { %v462_v18 = vpop.eup %461 }
 0x279   :  { %v344_v0 = vadd.f32 1.0, %v462_v18 }
 0x27b   :  { %463 = vrcp.f32 %v344_v0 }
 0x288   :  { %v464_v19 = vpop.eup %463 }
 0x289   :  { %348 = vst.msk [vmem:[#allocation5] sm:$0xff] %vm347_vm2, %v464_v19 }
 0x28a   :  { %496 = shalt.err (!%p493_p9)
}
 0x28b   :  { %358 = dma.vmem_to_hbm [thread:$0]  %s356_s11, 128, %s670_s7, [#allocation4]  }
 0x28c   :  { %507 = dma.done.wait [#allocation4], 128  }
 0x28d   :  { %508 = vsyncadd [#allocation4], 4294967168 }
 0x28e   :  { %362 = vsyncpa [#allocation3], 1 }
 0x28f   :  { %363 = vsyncpa [#allocation4], 1 }

// kernel: tpu_custom_call.1
= control target key start
LH: loop header
LB: loop body
LE: loop exit
PB: predicated region body
PF: predicated region fallthrough
CT: control target
= control target key end

     0   :  { %12 = vsyncpa [#allocation3], 0  ;;  %s663_s0 = inlined_call_operand.vmem [shape: f32[8,32], index: 0, kind: input, shape index: {}]   ;;  %s664_s1 = inlined_call_operand.vmem [shape: f32[32,256], index: 1, kind: input, shape index: {}]   ;;  %s665_s2 = inlined_call_operand.vmem [shape: f32[1,256], index: 2, kind: input, shape index: {}]   ;;  %s666_s3 = inlined_call_operand.hbm [shape: f32[256,128], index: 3, kind: input, shape index: {}]   ;;  %s667_s4 = inlined_call_operand.vmem [shape: f32[1,128], index: 4, kind: input, shape index: {}]   ;;  %s668_s5 = inlined_call_operand.vmem [shape: f32[128,8], index: 5, kind: input, shape index: {}]   ;;  %s669_s6 = inlined_call_operand.vmem [shape: f32[1,8], index: 6, kind: input, shape index: {}]   ;;  %s670_s7 = inlined_call_operand.hbm [shape: f32[8,8], index: 7, kind: output, shape index: {}]  }
   0x1   :  { %13 = vsyncpa [#allocation4], 0  ;;  %s509_s24 = smov [#allocation2]  }
   0x2   :  { %s25_s25 = sshll.u32 %s509_s24, 4  ;;  %s26_s25 = int_to_ptr.vmem [resolvable:$true] %s25_s25 }
   0x3   :  { %s473_s26 = scalar_lea.vmem %s26_s25, 4096  ;;  %p478_p1 = scmp.lt.s32.totalorder %s26_s25, %s26_s25 }
   0x4   :  { %p474_p0 = scmp.ne.s32.totalorder %s26_s25, %s473_s26  ;;  %p479_p2 = scmp.lt.s32.totalorder %s473_s26, %s473_s26 }
   0x6   :  { %p480_p3 = por %p479_p2, %p478_p1 }
   0x8   :  { %p481_p4 = pnand %p480_p3, %p474_p0 }
   0xa   :  { %484 = shalt.err (!%p481_p4)
}
   0xb   :  { %s510_s27 = smov 128   ;;  %s511_s28 = smov 8  }
   0xc   :  { %31 = dma.hbm_to_vmem [thread:$0]  %s666_s3, 4096, %s26_s25, [#allocation3], %s510_s27, %s510_s27, %s511_s28  }
   0xd   :  { %505 = dma.done.wait [#allocation3], 4096  }
   0xe   :  { %506 = vsyncadd [#allocation3], 4294963200  ;;  %v512_v0 = vmov 0.0   ;;  %v49_v1 = vld [vmem:[%s664_s1 + $0x38] sm:$0xff]  ;;  %v48_v2 = vld [vmem:[%s664_s1 + $0x30] sm:$0xff]  ;;  %vm62_vm0 = vcmask 261120   ;;  %v52_v54 = vlaneseq }
   0xf   :  { %130 = vmatprep.mubr.f32.mxu0 %v512_v0  ;;  %v47_v3 = vld [vmem:[%s664_s1 + $0x28] sm:$0xff]  ;;  %90 = vmatprep.subr.mxu0 %v49_v1  ;;  %v46_v4 = vld [vmem:[%s664_s1 + $0x20] sm:$0xff]  ;;  %v45_v5 = vld [vmem:[%s664_s1 + $0x18] sm:$0xff]  ;;  %vm513_vm1 = vmmov 0   ;;  %vm347_vm2 = vcmask 64512  }
  0x10   :  { %91 = vmatpush1.msra.mxu0 %v48_v2  ;;  %v44_v6 = vld [vmem:[%s664_s1 + $0x10] sm:$0xff]  ;;  %v170_v7 = vld [vmem:[#allocation2 + $0xf8] sm:$0xff]  ;;  %v43_v10 = vld [vmem:[%s664_s1 + $0x8] sm:$0xff]  ;;  %v53_v55 = vshrl.u32 %v52_v54, 7 }
  0x11   :  { %92 = vmatprep.subr.mxu0 %v47_v3  ;;  %v154_v8 = vld [vmem:[#allocation2 + $0x78] sm:$0xff]  ;;  %v169_v9 = vld [vmem:[#allocation2 + $0xf0] sm:$0xff]  ;;  %368 = vmatprep.subr.mxu1 %v170_v7  ;;  %v42_v12 = vld [vmem:[%s664_s1] sm:$0xff] }
  0x12   :  { %93 = vmatpush1.msra.mxu0 %v46_v4  ;;  %v153_v11 = vld [vmem:[#allocation2 + $0x70] sm:$0xff]  ;;  %369 = vmatpush3.msra.mxu1 %v154_v8  ;;  %v168_v13 = vld [vmem:[#allocation2 + $0xe8] sm:$0xff]  ;;  %v41_v14 = vld [vmem:[%s663_s0] sm:$0xff]  ;;  %v54_v56 = vsub.s32 0, %v53_v55  ;;  %v58_v58 = vsub.s32 1, %v53_v55 }
  0x13   :  { %94 = vmatprep.subr.mxu0 %v45_v5  ;;  %370 = vmatprep.subr.mxu1 %v169_v9  ;;  %v152_v15 = vld [vmem:[#allocation2 + $0x68] sm:$0xff]  ;;  %v167_v16 = vld [vmem:[#allocation2 + $0xe0] sm:$0xff]  ;;  %v166_v18 = vld [vmem:[#allocation2 + $0xd8] sm:$0xff] }
  0x14   :  { %95 = vmatpush1.msra.mxu0 %v44_v6  ;;  %371 = vmatpush3.msra.mxu1 %v153_v11  ;;  %v151_v17 = vld [vmem:[#allocation2 + $0x60] sm:$0xff]  ;;  %v150_v19 = vld [vmem:[#allocation2 + $0x58] sm:$0xff]  ;;  %v165_v20 = vld [vmem:[#allocation2 + $0xd0] sm:$0xff] }
  0x15   :  { %96 = vmatprep.subr.mxu0 %v43_v10  ;;  %372 = vmatprep.subr.mxu1 %v168_v13  ;;  %v149_v21 = vld [vmem:[#allocation2 + $0x50] sm:$0xff]  ;;  %v164_v22 = vld [vmem:[#allocation2 + $0xc8] sm:$0xff]  ;;  %v163_v24 = vld [vmem:[#allocation2 + $0xc0] sm:$0xff] }
  0x16   :  { %97 = vmatpush1.msra.mxu0 %v42_v12  ;;  %373 = vmatpush3.msra.mxu1 %v152_v15  ;;  %v148_v23 = vld [vmem:[#allocation2 + $0x48] sm:$0xff]  ;;  %v147_v25 = vld [vmem:[#allocation2 + $0x40] sm:$0xff]  ;;  %v162_v26 = vld [vmem:[#allocation2 + $0xb8] sm:$0xff] }
  0x17   :  { %364 = vmatmul.mubr.msk.f32.vlgmr.msra.gmra.mxu0 %vm62_vm0, %v41_v14  ;;  %374 = vmatprep.subr.mxu1 %v167_v16  ;;  %v146_v27 = vld [vmem:[#allocation2 + $0x38] sm:$0xff]  ;;  %v161_v28 = vld [vmem:[#allocation2 + $0xb0] sm:$0xff]  ;;  %v160_v30 = vld [vmem:[#allocation2 + $0xa8] sm:$0xff] }
  0x18   :  { %420 = vmatprep.subr.mxu0 %v512_v0  ;;  %375 = vmatpush3.msra.mxu1 %v151_v17  ;;  %v145_v29 = vld [vmem:[#allocation2 + $0x30] sm:$0xff]  ;;  %v144_v31 = vld [vmem:[#allocation2 + $0x28] sm:$0xff]  ;;  %v159_v32 = vld [vmem:[#allocation2 + $0xa0] sm:$0xff] }
  0x19   :  { %376 = vmatprep.subr.mxu1 %v166_v18  ;;  %v143_v33 = vld [vmem:[#allocation2 + $0x20] sm:$0xff]  ;;  %v158_v34 = vld [vmem:[#allocation2 + $0x98] sm:$0xff]  ;;  %v157_v36 = vld [vmem:[#allocation2 + $0x90] sm:$0xff]  ;;  %452 = vmatprep.mubr.msk.f32.mxu0 %vm513_vm1, %v512_v0 }
  0x1a   :  { %377 = vmatpush3.msra.mxu1 %v150_v19  ;;  %v142_v35 = vld [vmem:[#allocation2 + $0x18] sm:$0xff]  ;;  %v141_v37 = vld [vmem:[#allocation2 + $0x10] sm:$0xff]  ;;  %v156_v38 = vld [vmem:[#allocation2 + $0x88] sm:$0xff] }
  0x1b   :  { %378 = vmatprep.subr.mxu1 %v165_v20  ;;  %v140_v39 = vld [vmem:[#allocation2 + $0x8] sm:$0xff]  ;;  %v155_v40 = vld [vmem:[#allocation2 + $0x80] sm:$0xff]  ;;  %v263_v42 = vld [vmem:[%s668_s5 + $0x78] sm:$0xff] }
  0x1c   :  { %379 = vmatpush3.msra.mxu1 %v149_v21  ;;  %v139_v41 = vld [vmem:[#allocation2] sm:$0xff]  ;;  %v262_v43 = vld [vmem:[%s668_s5 + $0x70] sm:$0xff]  ;;  %421 = vmatpush3.msra.mxu0 %v263_v42  ;;  %v261_v44 = vld [vmem:[%s668_s5 + $0x68] sm:$0xff] }
  0x1d   :  { %380 = vmatprep.subr.mxu1 %v164_v22  ;;  %422 = vmatprep.subr.mxu0 %v512_v0  ;;  %v260_v45 = vld [vmem:[%s668_s5 + $0x60] sm:$0xff]  ;;  %v259_v46 = vld [vmem:[%s668_s5 + $0x58] sm:$0xff]  ;;  %v258_v47 = vld [vmem:[%s668_s5 + $0x50] sm:$0xff] }
  0x1e   :  { %381 = vmatpush3.msra.mxu1 %v148_v23  ;;  %423 = vmatpush3.msra.mxu0 %v262_v43  ;;  %v257_v48 = vld [vmem:[%s668_s5 + $0x48] sm:$0xff]  ;;  %v256_v49 = vld [vmem:[%s668_s5 + $0x40] sm:$0xff]  ;;  %v255_v50 = vld [vmem:[%s668_s5 + $0x38] sm:$0xff] }
  0x1f   :  { %382 = vmatprep.subr.mxu1 %v163_v24  ;;  %424 = vmatprep.subr.mxu0 %v512_v0  ;;  %v254_v51 = vld [vmem:[%s668_s5 + $0x30] sm:$0xff]  ;;  %v253_v52 = vld [vmem:[%s668_s5 + $0x28] sm:$0xff]  ;;  %v252_v53 = vld [vmem:[%s668_s5 + $0x20] sm:$0xff] }
  0x20   :  { %383 = vmatpush3.msra.mxu1 %v147_v25  ;;  %425 = vmatpush3.msra.mxu0 %v261_v44  ;;  %v50_v57 = vld [vmem:[%s665_s2] sm:$0x3]  ;;  %v251_v4 = vld [vmem:[%s668_s5 + $0x18] sm:$0xff]  ;;  %v250_v5 = vld [vmem:[%s668_s5 + $0x10] sm:$0xff] }
  0x21   :  { %384 = vmatprep.subr.mxu1 %v162_v26  ;;  %426 = vmatprep.subr.mxu0 %v512_v0  ;;  %v55_v59 = vrot.slane %v50_v57, %v54_v56  ;;  %v59_v60 = vrot.slane %v50_v57, %v58_v58  ;;  %v249_v6 = vld [vmem:[%s668_s5 + $0x8] sm:$0xff]  ;;  %v248_v7 = vld [vmem:[%s668_s5] sm:$0xff]  ;;  %s514_s5 = smov [#allocation5]  }
  0x22   :  { %385 = vmatpush3.msra.mxu1 %v146_v27  ;;  %427 = vmatpush3.msra.mxu0 %v260_v45  ;;  %v365_v9 = vld [vmem:[%s667_s4] ss:$0 sm:$0xff]  ;;  %s355_s11 = sshll.u32 %s514_s5, 4  ;;  %s356_s11 = int_to_ptr.vmem [resolvable:$true] %s355_s11 }
  0x23   :  { %386 = vmatprep.subr.mxu1 %v161_v28  ;;  %428 = vmatprep.subr.mxu0 %v512_v0  ;;  %v366_v13 = vld [vmem:[%s669_s6] ss:$0 sm:$0xff]  ;;  %s485_s4 = scalar_lea.vmem %s356_s11, 128  ;;  %p490_p6 = scmp.lt.s32.totalorder %s356_s11, %s356_s11 }
  0x24   :  { %387 = vmatpush3.msra.mxu1 %v145_v29  ;;  %429 = vmatpush3.msra.mxu0 %v259_v46  ;;  %p486_p5 = scmp.ne.s32.totalorder %s356_s11, %s485_s4  ;;  %p491_p7 = scmp.lt.s32.totalorder %s485_s4, %s485_s4 }
  0x25   :  { %388 = vmatprep.subr.mxu1 %v160_v30  ;;  %430 = vmatprep.subr.mxu0 %v512_v0 }
  0x26   :  { %389 = vmatpush3.msra.mxu1 %v144_v31  ;;  %431 = vmatpush3.msra.mxu0 %v258_v47  ;;  %p492_p8 = por %p491_p7, %p490_p6 }
  0x27   :  { %390 = vmatprep.subr.mxu1 %v159_v32  ;;  %432 = vmatprep.subr.mxu0 %v512_v0 }
  0x28   :  { %391 = vmatpush3.msra.mxu1 %v143_v33  ;;  %433 = vmatpush3.msra.mxu0 %v257_v48  ;;  %p493_p9 = pnand %p492_p8, %p486_p5 }
  0x29   :  { %392 = vmatprep.subr.mxu1 %v158_v34  ;;  %434 = vmatprep.subr.mxu0 %v512_v0 }
  0x2a   :  { %393 = vmatpush3.msra.mxu1 %v142_v35  ;;  %435 = vmatpush3.msra.mxu0 %v256_v49 }
  0x2b   :  { %394 = vmatprep.subr.mxu1 %v157_v36  ;;  %436 = vmatprep.subr.mxu0 %v512_v0 }
  0x2c   :  { %395 = vmatpush3.msra.mxu1 %v141_v37  ;;  %437 = vmatpush3.msra.mxu0 %v255_v50 }
  0x2d   :  { %396 = vmatprep.subr.mxu1 %v156_v38  ;;  %438 = vmatprep.subr.mxu0 %v512_v0 }
  0x2e   :  { %397 = vmatpush3.msra.mxu1 %v140_v39  ;;  %439 = vmatpush3.msra.mxu0 %v254_v51 }
  0x2f   :  { %398 = vmatprep.subr.mxu1 %v155_v40  ;;  %440 = vmatprep.subr.mxu0 %v512_v0 }
  0x30   :  { %399 = vmatpush3.msra.mxu1 %v139_v41  ;;  %441 = vmatpush3.msra.mxu0 %v253_v52 }
  0x31   :  { %442 = vmatprep.subr.mxu0 %v512_v0 }
  0x32   :  { %443 = vmatpush3.msra.mxu0 %v252_v53 }
  0x33   :  { %444 = vmatprep.subr.mxu0 %v512_v0 }
  0x34   :  { %445 = vmatpush3.msra.mxu0 %v251_v4 }
  0x35   :  { %446 = vmatprep.subr.mxu0 %v512_v0 }
  0x36   :  { %447 = vmatpush3.msra.mxu0 %v250_v5 }
  0x37   :  { %448 = vmatprep.subr.mxu0 %v512_v0 }
  0x38   :  { %449 = vmatpush3.msra.mxu0 %v249_v6 }
  0x39   :  { %450 = vmatprep.subr.mxu0 %v512_v0 }
  0x3a   :  { %451 = vmatpush3.msra.mxu0 %v248_v7 }
  0xd7   :  { %v132_v61 = vpop.f32.mrf.mxu0 }
  0xd8   :  { %v133_v62 = vadd.f32 %v132_v61, %v55_v59 }
  0xd9   :  { %v134_v63 = vpop.f32.mrf.mxu0 }
  0xda   :  { %v135_v1 = vadd.f32 %v134_v63, %v59_v60  ;;  %v137_v3 = vmax.f32 %v133_v62, 0.0 }
  0xdc   :  { %v138_v2 = vmax.f32 %v135_v1, 0.0 }
  0xde   :  { %242 = vmatprep.mubr.f32.mxu1 %v138_v2 }
  0xdf   :  { %243 = vmatmul.mubr.f32.vlgmr.msra.gmra.mxu1 %v137_v3 }
 0x19f   :  { %v400_v8 = vpop.f32.mrf.mxu1 }
 0x1a1   :  { %v401_v10 = vpop.f32.mrf.mxu1 }
 0x1a2   :  { %v402_v11 = vadd.f32 %v401_v10, %v400_v8 }
 0x1a4   :  { %v245_v12 = vadd.f32 %v402_v11, %v365_v9 }
 0x1a6   :  { %453 = vmatmul.mubr.f32.vlgmr.msra.gmra.mxu0 %v245_v12 }
 0x266   :  { %v337_v14 = vpop.f32.mrf.mxu0 }
 0x267   :  { %v338_v15 = vadd.f32 %v366_v13, %v337_v14 }
 0x268   :  { %v454_v16 = vpop.f32.mrf.mxu0 }
 0x269   :  { %v367_v17 = vmul.f32 -1.442695, %v338_v15 }
 0x26b   :  { %461 = vpow2.f32 %v367_v17 }
 0x278   :  { %v462_v18 = vpop.eup %461 }
 0x279   :  { %v344_v0 = vadd.f32 1.0, %v462_v18 }
 0x27b   :  { %463 = vrcp.f32 %v344_v0 }
 0x288   :  { %v464_v19 = vpop.eup %463 }
 0x289   :  { %348 = vst.msk [vmem:[#allocation5] sm:$0xff] %vm347_vm2, %v464_v19 }
 0x28a   :  { %496 = shalt.err (!%p493_p9)
}
 0x28b   :  { %358 = dma.vmem_to_hbm [thread:$0]  %s356_s11, 128, %s670_s7, [#allocation4]  }
 0x28c   :  { %507 = dma.done.wait [#allocation4], 128  }
 0x28d   :  { %508 = vsyncadd [#allocation4], 4294967168 }
 0x28e   :  { %362 = vsyncpa [#allocation3], 1 }
 0x28f   :  { %363 = vsyncpa [#allocation4], 1 }

</bundles_post_ra>
